<compile_context>
chip_gen: v7x
topology: tpu7x:2x2x1
jax: 0.10.0
libtpu: 0.0.40
codegen_flags: <defaults>
</compile_context>

<pallas_src>
import functools

import jax
import jax.numpy as jnp
import numpy as np
from jax.experimental import pallas as pl
from jax.experimental.pallas import tpu as pltpu

_MIB = 1 << 20


@functools.lru_cache(maxsize=1)
def _vmem_budget():
    """(target bytes per x/out block, scoped VMEM limit bytes), gen-gated."""
    try:
        info = pltpu.get_tpu_info()
        cap = int(getattr(info, "vmem_capacity_bytes", 64 * _MIB))
    except Exception:
        cap = 64 * _MIB  # conservative (v7x-sized) fallback
    # Keep the scoped request well under physical VMEM on every generation
    # (v5e/v6e: 128 MiB physical, v7x: 64 MiB physical; defaults 16/32/32).
    limit = min(40 * _MIB, (cap * 5) // 8)
    # Double-buffered input + double-buffered output = 4 x-sized blocks,
    # plus stats blocks and internal scratch slack.
    target = max(2 * _MIB, (limit - 8 * _MIB) // 4)
    return target, limit


def _pick_tile(extent, unit_bytes, target_bytes, align):
    """Largest align-multiple tile (<= extent) with tile*unit_bytes <= target.

    Also caps the tile so the grid keeps >= 4 steps along this axis whenever
    that still leaves >= 1 MiB blocks (lets v7x shard blocks across both
    TensorCores; harmless on single-TC v5e/v6e). Ragged last blocks are fine
    (cdiv grid + masked stores), so no divisor constraint."""
    if extent <= align:
        return extent  # full-extent block is always layout-legal
    unit_bytes = max(1, int(unit_bytes))
    cap = (extent // align) * align
    t = (target_bytes // unit_bytes) // align * align
    t = max(align, min(t, cap))
    min_tile = max(align, (_MIB // unit_bytes) // align * align)
    four_steps = (extent // 4) // align * align
    if four_steps >= min_tile:
        t = min(t, four_steps)
    return t


def _row_stats_kernel(x_ref, stats_ref, o_ref, *, eps, tm, resident):
    # x_ref / o_ref: (tm, H*W) tiles of the (N*C, H*W) view.
    # stats_ref: packed [mean, 1/std] pairs per (n, c) row — either the full
    # resident (rows_pad, 2) block (slice by program_id) or a (tm, 2) tile.
    x = x_ref[...].astype(jnp.float32)
    if resident:
        start = pl.multiple_of(pl.program_id(0) * tm, 8)
        st = stats_ref[pl.ds(start, tm), :]
    else:
        st = stats_ref[...]
    m = st[:, 0:1]
    inv_s = st[:, 1:2]
    o_ref[...] = (jnp.where(x > eps, x - m, x) * inv_s).astype(o_ref.dtype)


def _col_stats_kernel(x_ref, stats_ref, o_ref, *, eps):
    # x_ref / o_ref: (trm, tc) tiles of the (N, C*H*W) view.
    # stats_ref: (2, tc) block holding [mean; 1/std] for this column window.
    x = x_ref[...].astype(jnp.float32)
    m = stats_ref[0:1, :]
    inv_s = stats_ref[1:2, :]
    o_ref[...] = (jnp.where(x > eps, x - m, x) * inv_s).astype(o_ref.dtype)


@functools.partial(jax.jit, static_argnums=(3,))
def sparse_normalize(x, mean, std, eps):
    """x: (N, C, H, W); mean/std: (C,); eps: python float (static)."""
    N, C, H, W = x.shape
    dtype = x.dtype
    itemsize = jnp.dtype(dtype).itemsize
    eps = float(eps)
    target, vmem_limit = _vmem_budget()

    mean32 = jnp.asarray(mean, jnp.float32)
    inv32 = 1.0 / jnp.asarray(std, jnp.float32)

    hw = H * W
    lane_dense_hw = (hw % 128 == 0) and (hw >= 512)

    if lane_dense_hw:
        # ------- path A: (N*C, H*W) rows, per-row stats ---------------------
        rows, cols = N * C, hw
        x2 = x.reshape(rows, cols)
        tm = _pick_tile(rows, cols * itemsize, target, 8)
        nblk = pl.cdiv(rows, tm)
        rows_pad = nblk * tm
        stats = jnp.stack(
            [jnp.broadcast_to(mean32[None, :], (N, C)).reshape(rows),
             jnp.broadcast_to(inv32[None, :], (N, C)).reshape(rows)],
            axis=-1)                                          # (rows, 2) f32
        if rows_pad > rows:
            stats = jnp.pad(stats, ((0, rows_pad - rows), (0, 0)))
        # Keep stats resident (single DMA for the whole grid) when the
        # lane-padded VMEM footprint is small; else stream (tm, 2) tiles.
        resident = (nblk > 1) and (rows_pad * 512 <= 2 * _MIB)
        if resident:
            stats_spec = pl.BlockSpec((rows_pad, 2), lambda i: (0, 0))
        else:
            stats_spec = pl.BlockSpec((tm, 2), lambda i: (i, 0))
        kernel = functools.partial(_row_stats_kernel, eps=eps, tm=tm,
                                   resident=resident)
        out2 = pl.pallas_call(
            kernel,
            out_shape=jax.ShapeDtypeStruct((rows, cols), dtype),
            grid=(nblk,),
            in_specs=[pl.BlockSpec((tm, cols), lambda i: (i, 0)), stats_spec],
            out_specs=pl.BlockSpec((tm, cols), lambda i: (i, 0)),
            compiler_params=pltpu.CompilerParams(
                dimension_semantics=("parallel",),
                vmem_limit_bytes=vmem_limit),
        )(x2, stats)
    else:
        # ------- path B: (N, C*H*W) rows, per-column stats ------------------
        # (small / 128-unaligned H*W would otherwise hit masked partial stores)
        rows, cols = N, C * hw
        x2 = x.reshape(rows, cols)
        trm = _pick_tile(rows, cols * itemsize, target, 8)
        # +16 B/column reserves the lane-padded f32 stats rows in the budget.
        unit_col = trm * itemsize + 16
        tc = cols if cols * unit_col <= target else _pick_tile(
            cols, unit_col, target, 128)
        grid = (pl.cdiv(rows, trm), pl.cdiv(cols, tc))
        stats = jnp.concatenate(
            [jnp.broadcast_to(mean32[:, None], (C, hw)).reshape(1, cols),
             jnp.broadcast_to(inv32[:, None], (C, hw)).reshape(1, cols)],
            axis=0)                                           # (2, cols) f32
        if tc == cols:
            stats_spec = pl.BlockSpec((2, cols), lambda i, j: (0, 0))  # resident
        else:
            stats_spec = pl.BlockSpec((2, tc), lambda i, j: (0, j))
        kernel = functools.partial(_col_stats_kernel, eps=eps)
        out2 = pl.pallas_call(
            kernel,
            out_shape=jax.ShapeDtypeStruct((rows, cols), dtype),
            grid=grid,
            in_specs=[pl.BlockSpec((trm, tc), lambda i, j: (i, j)), stats_spec],
            out_specs=pl.BlockSpec((trm, tc), lambda i, j: (i, j)),
            compiler_params=pltpu.CompilerParams(
                dimension_semantics=("parallel", "parallel"),
                vmem_limit_bytes=vmem_limit),
        )(x2, stats)

    return out2.reshape(N, C, H, W)


def _reference(x, mean, std, eps):
    """Pure-JAX mirror of the PyTorch forward (computed in f32)."""
    x32 = x.astype(jnp.float32)
    m = jnp.asarray(mean, jnp.float32)[None, :, None, None]
    s = jnp.asarray(std, jnp.float32)[None, :, None, None]
    nz = (x32 > eps).astype(jnp.float32)
    return (x32 - m * nz) / s


if __name__ == "__main__":
    eps = 0.1
    k0, k1 = jax.random.split(jax.random.PRNGKey(0), 2)

    # Primary shape consistent with the module: NCHW input, per-channel stats.
    N, C, H, W = 2, 4, 16, 16
    x = jax.random.normal(k0, (N, C, H, W), dtype=jnp.float32)
    mean = jnp.asarray(np.linspace(-0.5, 0.5, C), dtype=jnp.float32)
    std = jnp.asarray(np.linspace(0.5, 2.0, C), dtype=jnp.float32)

    out = jax.block_until_ready(sparse_normalize(x, mean, std, eps))
    ref = _reference(x, mean, std, eps)
    np.testing.assert_allclose(np.asarray(out), np.asarray(ref),
                               rtol=1e-5, atol=1e-6)

    # Secondary check: wide, 128-aligned H*W -> row-stats path with a ragged
    # row grid (N*C = 15, tile 8) and the resident-stats slicing code path.
    N2, C2, H2, W2 = 3, 5, 32, 32
    x2 = jax.random.normal(k1, (N2, C2, H2, W2), dtype=jnp.float32)
    mean2 = jnp.asarray(np.linspace(-1.0, 1.0, C2), dtype=jnp.float32)
    std2 = jnp.asarray(np.linspace(0.75, 1.5, C2), dtype=jnp.float32)
    out2 = jax.block_until_ready(sparse_normalize(x2, mean2, std2, eps))
    np.testing.assert_allclose(np.asarray(out2),
                               np.asarray(_reference(x2, mean2, std2, eps)),
                               rtol=1e-5, atol=1e-6)

    # bf16 path: stats and arithmetic stay f32 inside the kernel, cast on store.
    xb = x2.astype(jnp.bfloat16)
    outb = jax.block_until_ready(sparse_normalize(xb, mean2, std2, eps))
    np.testing.assert_allclose(np.asarray(outb.astype(jnp.float32)),
                               np.asarray(_reference(xb, mean2, std2, eps)),
                               rtol=2e-2, atol=2e-2)

    print("KERNEL_OK")
</pallas_src>

<mosaic_0001>
module attributes {stable_mosaic.version = 11 : i64} {
  func.func @_col_stats_kernel(%arg0: i32, %arg1: i32, %arg2: memref<2x1024xf32, #tpu.memory_space<vmem>>, %arg3: memref<2x1024xf32, #tpu.memory_space<vmem>>, %arg4: memref<2x1024xf32, #tpu.memory_space<vmem>>) attributes {dimension_semantics = [#tpu.dimension_semantics<parallel>, #tpu.dimension_semantics<parallel>], iteration_bounds = array<i64: 1, 1>, scalar_prefetch = 0 : i64, scratch_operands = 0 : i64, tpu.core_type = #tpu.core_type<tc>, window_params = [{transform_indices = @transform_0, window_bounds = array<i64: 2, 1024>}, {pipeline_mode = #tpu.pipeline_mode<synchronous>, transform_indices = @transform_1, window_bounds = array<i64: 2, 1024>}, {transform_indices = @transform_2, window_bounds = array<i64: 2, 1024>}]} {
    %c0 = arith.constant 0 : index
    %c0_0 = arith.constant 0 : index
    %0 = vector.load %arg2[%c0, %c0_0] : memref<2x1024xf32, #tpu.memory_space<vmem>>, vector<2x1024xf32>
    %c0_1 = arith.constant 0 : index
    %c0_2 = arith.constant 0 : index
    %1 = vector.load %arg3[%c0_1, %c0_2] : memref<2x1024xf32, #tpu.memory_space<vmem>>, vector<1x1024xf32>
    %c1 = arith.constant 1 : index
    %c0_3 = arith.constant 0 : index
    %2 = vector.load %arg3[%c1, %c0_3] : memref<2x1024xf32, #tpu.memory_space<vmem>>, vector<1x1024xf32>
    %cst = arith.constant 1.000000e-01 : f32
    %3 = vector.broadcast %cst : f32 to vector<2x1024xf32>
    %4 = arith.cmpf ogt, %0, %3 : vector<2x1024xf32>
    %5 = vector.broadcast %1 : vector<1x1024xf32> to vector<2x1024xf32>
    %6 = arith.subf %0, %5 : vector<2x1024xf32>
    %7 = arith.select %4, %6, %0 : vector<2x1024xi1>, vector<2x1024xf32>
    %8 = vector.broadcast %2 : vector<1x1024xf32> to vector<2x1024xf32>
    %9 = arith.mulf %7, %8 : vector<2x1024xf32>
    %c0_4 = arith.constant 0 : index
    %c0_5 = arith.constant 0 : index
    %10 = vector.load %arg4[%c0_4, %c0_5] : memref<2x1024xf32, #tpu.memory_space<vmem>>, vector<2x1024xf32>
    tpu.vector_store %arg4[%c0_4, %c0_5], %9 {strides = array<i32>} : memref<2x1024xf32, #tpu.memory_space<vmem>>, vector<2x1024xf32>,
    return
  }
  func.func @transform_0(%arg0: i32, %arg1: i32) -> (i32, i32) {
    %c0_i32 = arith.constant 0 : i32
    return %arg0, %arg1 : i32, i32
  }
  func.func @transform_1(%arg0: i32, %arg1: i32) -> (i32, i32) {
    %c0_i32 = arith.constant 0 : i32
    %c0_i32_0 = arith.constant 0 : i32
    %c0_i32_1 = arith.constant 0 : i32
    return %c0_i32, %c0_i32_0 : i32, i32
  }
  func.func @transform_2(%arg0: i32, %arg1: i32) -> (i32, i32) {
    %c0_i32 = arith.constant 0 : i32
    return %arg0, %arg1 : i32, i32
  }
}

</mosaic_0001>

<bundles_post_ra>
// kernel: sparse_normalize.1
= control target key start
LH: loop header
LB: loop body
LE: loop exit
PB: predicated region body
PF: predicated region fallthrough
CT: control target
= control target key end

     0   :  { %v19_v0 = vlaneseq  ;;  %v170_v1 = vmov 1983009808   ;;  %s204_s1 = inlined_call_operand.vmem [shape: f32[2,1024], index: 1, kind: input, shape index: {}]   ;;  %s205_s0 = inlined_call_operand.vmem [shape: f32[2,1024], index: 0, kind: input, shape index: {}]   ;;  %s206_s2 = inlined_call_operand.vmem [shape: f32[2,1024], index: 2, kind: output, shape index: {}]  }
   0x1   :  { %v54_v2 = vunpack.c.l.s4 %v170_v1  ;;  %v13_v4 = vld [vmem:[%s204_s1] ss:$2 sm:$0xff]  ;;  %v168_v6 = vld [vmem:[%s204_s1 + $0x1] ss:$2 sm:$0xff] }
   0x2   :  { %v20_v3 = vshrl.u32 %v19_v0, 7  ;;  %v11_v27 = vld [vmem:[%s205_s0] sm:$0xff]  ;;  %v12_v49 = vld [vmem:[%s205_s0 + $0x8] sm:$0xff] }
   0x3   :  { %v55_v5 = vunpack.c.0.s8 %v54_v2  ;;  %vm16_vm0 = vcmp.gt.f32.partialorder %v11_v27, 0.1  ;;  %vm17_vm1 = vcmp.gt.f32.partialorder %v12_v49, 0.1 }
   0x4   :  { %v21_v7 = vsub.s32 0, %v20_v3  ;;  %v25_v8 = vsub.s32 1, %v20_v3  ;;  %v29_v9 = vsub.s32 2, %v20_v3  ;;  %v33_v10 = vsub.s32 3, %v20_v3 }
   0x5   :  { %v58_v11 = vsub.s32 %v55_v5, %v20_v3  ;;  %v37_v12 = vsub.s32 4, %v20_v3  ;;  %v41_v13 = vsub.s32 5, %v20_v3  ;;  %v45_v14 = vsub.s32 6, %v20_v3 }
   0x6   :  { %v22_v15 = vrot.slane %v13_v4, %v21_v7  ;;  %v26_v16 = vrot.slane %v13_v4, %v25_v8  ;;  %v30_v17 = vrot.slane %v13_v4, %v29_v9  ;;  %v34_v18 = vrot.slane %v13_v4, %v33_v10 }
   0x7   :  { %v95_v19 = vrot.slane %v168_v6, %v21_v7  ;;  %v99_v20 = vrot.slane %v168_v6, %v25_v8  ;;  %v103_v21 = vrot.slane %v168_v6, %v29_v9  ;;  %v107_v22 = vrot.slane %v168_v6, %v33_v10 }
   0x8   :  { %v51_v23 = vcombine.low %v22_v15, %v26_v16  ;;  %v52_v24 = vcombine.low %v30_v17, %v34_v18  ;;  %v38_v25 = vrot.slane %v13_v4, %v37_v12  ;;  %v42_v26 = vrot.slane %v13_v4, %v41_v13 }
   0x9   :  { %v124_v28 = vcombine.low %v95_v19, %v99_v20  ;;  %v125_v29 = vcombine.low %v103_v21, %v107_v22  ;;  %v46_v30 = vrot.slane %v13_v4, %v45_v14  ;;  %v49_v31 = vsub.s32 7, %v20_v3 }
   0xa   :  { %v59_v32 = vrot.slane %v51_v23, %v58_v11  ;;  %v66_v33 = vrot.slane %v52_v24, %v58_v11  ;;  %v68_v34 = vcombine.low %v38_v25, %v42_v26  ;;  %v111_v35 = vrot.slane %v168_v6, %v37_v12 }
   0xb   :  { %v132_v36 = vrot.slane %v124_v28, %v58_v11  ;;  %v139_v37 = vrot.slane %v125_v29, %v58_v11  ;;  %v50_v38 = vrot.slane %v13_v4, %v49_v31  ;;  %v115_v39 = vrot.slane %v168_v6, %v41_v13 }
   0xc   :  { %v67_v40 = vcombine.low %v59_v32, %v66_v33  ;;  %v119_v41 = vrot.slane %v168_v6, %v45_v14  ;;  %v123_v42 = vrot.slane %v168_v6, %v49_v31  ;;  %v76_v45 = vrot.slane %v68_v34, %v58_v11 }
   0xd   :  { %v140_v43 = vcombine.low %v132_v36, %v139_v37  ;;  %v69_v44 = vcombine.low %v46_v30, %v50_v38  ;;  %v141_v46 = vcombine.low %v111_v35, %v115_v39 }
   0xe   :  { %v87_v47 = vsub.f32 %v11_v27, %v67_v40  ;;  %v142_v48 = vcombine.low %v119_v41, %v123_v42 }
   0xf   :  { %v83_v50 = vrot.slane %v69_v44, %v58_v11  ;;  %v149_v51 = vrot.slane %v141_v46, %v58_v11 }
  0x10   :  { %v89_v52 = vsel %vm16_vm0, %v87_v47, %v11_v27  ;;  %v156_v53 = vrot.slane %v142_v48, %v58_v11 }
  0x11   :  { %v160_v54 = vmul.f32 %v140_v43, %v89_v52  ;;  %v84_v55 = vcombine.low %v76_v45, %v83_v50 }
  0x12   :  { %v157_v56 = vcombine.low %v149_v51, %v156_v53 }
  0x13   :  { %162 = vst [vmem:[%s206_s2] sm:$0xff] %v160_v54  ;;  %v88_v57 = vsub.f32 %v12_v49, %v84_v55 }
  0x15   :  { %v90_v58 = vsel %vm17_vm1, %v88_v57, %v12_v49 }
  0x16   :  { %v161_v59 = vmul.f32 %v157_v56, %v90_v58 }
  0x18   :  { %163 = vst [vmem:[%s206_s2 + $0x8] sm:$0xff] %v161_v59 }

</bundles_post_ra>
